<compile_context>
chip_gen: v6e
topology: v6e:2x2x1
jax: 0.10.0
libtpu: 0.0.40
codegen_flags: <defaults>
</compile_context>

<pallas_src>
import functools

import jax
import jax.numpy as jnp
from jax.experimental import pallas as pl
from jax.experimental.pallas import tpu as pltpu

_LANE = 128


def _round_up(x, m):
    return ((x + m - 1) // m) * m


def _round_down(x, m):
    return max(m, (x // m) * m)


# --------------------------------------------------------------------------- #
# Kernels
# --------------------------------------------------------------------------- #
def _pca_kernel(x_ref, evec_ref, bias_ref, scale_ref, z_ref):
    """Single-F-block variant: z = (x @ E^T - bias) * scale."""
    z = jax.lax.dot_general(
        x_ref[...],
        evec_ref[...],
        dimension_numbers=(((1,), (1,)), ((), ())),  # contract feature axes (NT)
        preferred_element_type=jnp.float32,
    )
    z_ref[...] = ((z - bias_ref[...]) * scale_ref[...]).astype(z_ref.dtype)


def _pca_kernel_acc(x_ref, evec_ref, bias_ref, scale_ref, z_ref, acc_ref):
    """F-tiled variant: accumulate partial products over the last ("arbitrary")
    grid axis; apply the bias/scale epilogue on the final contraction step."""
    f = pl.program_id(2)

    @pl.when(f == 0)
    def _():
        acc_ref[...] = jnp.zeros_like(acc_ref)

    acc_ref[...] += jax.lax.dot_general(
        x_ref[...],
        evec_ref[...],
        dimension_numbers=(((1,), (1,)), ((), ())),
        preferred_element_type=jnp.float32,
    )

    @pl.when(f == pl.num_programs(2) - 1)
    def _():
        z_ref[...] = (
            (acc_ref[...] - bias_ref[...]) * scale_ref[...]
        ).astype(z_ref.dtype)


# --------------------------------------------------------------------------- #
# Capability probes
# --------------------------------------------------------------------------- #
@functools.cache
def _vmem_capacity_bytes() -> int:
    try:
        cap = int(getattr(pltpu.get_tpu_info(), "vmem_capacity_bytes", 0))
        if cap > 0:
            return cap
    except Exception:
        pass
    return 64 * 1024 * 1024  # conservative fallback: v7x per-TensorCore VMEM


@functools.cache
def _single_buffer_supported() -> bool:
    """True iff pl.BlockSpec(pipeline_mode=pl.Buffered(1)) compiles on this JAX."""
    if not hasattr(pl, "Buffered"):
        return False
    try:
        spec = pl.BlockSpec((8, 128), lambda i: (0, 0), pipeline_mode=pl.Buffered(1))
    except Exception:
        return False

    def _copy(x_ref, o_ref):
        o_ref[...] = x_ref[...]

    try:
        out = pl.pallas_call(
            _copy,
            out_shape=jax.ShapeDtypeStruct((8, 128), jnp.float32),
            grid=(2,),
            in_specs=[spec],
            out_specs=pl.BlockSpec((8, 128), lambda i: (0, 0)),
        )(jnp.ones((8, 128), jnp.float32))
        jax.block_until_ready(out)
        return True
    except Exception:
        return False


def _spec(block_shape, index_map, *, single_buffer=False):
    """BlockSpec; single-buffered (Buffered(1)) for grid-invariant operands."""
    if single_buffer:
        try:
            return pl.BlockSpec(block_shape, index_map, pipeline_mode=pl.Buffered(1))
        except Exception:
            pass
    return pl.BlockSpec(block_shape, index_map)


# --------------------------------------------------------------------------- #
# Tiling
# --------------------------------------------------------------------------- #
def _choose_tiles(batch, kp0, feat, x_item, evec_item, budget, single_ok,
                  block_b, block_k, block_f):
    """Pick (tile_batch, tile_k, tile_feat, evec_single) from a VMEM budget."""
    out_item = 4                   # f32 output / accumulator bookkeeping
    sub = max(8, 32 // x_item)     # sublane multiple for the x compute dtype
    x_budget = int(budget * 0.45)  # x double buffer
    ev_budget = int(budget * 0.30)  # eigenvector buffer(s)

    # Contraction (feature) tile: keep the full feature axis unless even a
    # minimal (tb=sub, tk=128) working set can no longer fit its budget.
    if block_f is not None:
        tf = min(int(block_f), feat)
    else:
        max_tf = min(x_budget // (2 * sub * x_item),
                     ev_budget // (2 * _LANE * evec_item))
        max_tf = _round_down(max_tf, _LANE)
        tf = feat if feat <= max_tf else max_tf
    f_tiled = tf < feat

    # Component (K) tile: keep the whole (padded) basis VMEM-resident when it
    # fits, otherwise stream lane-dense 128-multiples of it.
    if block_k is not None:
        tk = min(_round_up(int(block_k), _LANE), kp0)
    else:
        resident_bufs = 1 if (single_ok and not f_tiled) else 2
        if not f_tiled and resident_bufs * kp0 * tf * evec_item <= ev_budget:
            tk = kp0
        else:
            tk = min(_round_down(ev_budget // (2 * tf * evec_item), _LANE), kp0)
    evec_single = single_ok and (tk >= kp0) and not f_tiled
    ev_bytes = (1 if evec_single else 2) * tk * tf * evec_item

    # Batch tile: spend what is left on the x / out double buffers (the x
    # stream is the HBM-bandwidth lever of this memory-bound kernel).
    if block_b is not None:
        tb = max(sub, _round_up(int(block_b), sub))
    else:
        remaining = max(budget - ev_bytes, budget // 8)
        per_row = 2 * tf * x_item + (2 + (1 if f_tiled else 0)) * tk * out_item
        tb = _round_down(remaining // per_row, sub)
        tb = min(tb, 2048, _round_up(batch, sub))
        # Give a megacore chip (2 TensorCores) at least two parallel grid steps.
        if batch > sub and pl.cdiv(kp0, tk) * pl.cdiv(batch, tb) < 2:
            tb = _round_up(pl.cdiv(batch, 2), sub)
    tb = min(tb, _round_up(batch, sub))
    return tb, tk, tf, evec_single


# --------------------------------------------------------------------------- #
# Public wrapper
# --------------------------------------------------------------------------- #
def pca_encoder(x, eigenvectors, eigenvalues, mean=None, *, whiten=False,
                compute_dtype=None, block_b=None, block_k=None, block_f=None):
    """Pallas-TPU implementation of PCAEncoder.forward.

    z = (x - mean) @ eigenvectors.T     [ / sqrt(eigenvalues) if whiten ]

    implemented as z = (x @ E^T - mean @ E^T) * scale with the K-length
    bias/scale computed once in the wrapper.
    """
    batch, feat = x.shape
    num_components = eigenvectors.shape[0]
    out_dtype = x.dtype

    if mean is None:
        mean = jnp.zeros((feat,), dtype=x.dtype)

    # K-length epilogue vectors (computed once, outside the kernel, in f32).
    evec_f32 = eigenvectors.astype(jnp.float32)
    bias = mean.astype(jnp.float32) @ evec_f32.T                     # (K,)
    if whiten:
        scale = 1.0 / jnp.sqrt(eigenvalues.astype(jnp.float32))      # (K,)
    else:
        scale = jnp.ones((num_components,), jnp.float32)             # exact no-op

    # Optional reduced-precision MXU inputs (halves the HBM x stream).
    cdtype = jnp.dtype(compute_dtype) if compute_dtype is not None else jnp.dtype(x.dtype)
    x_in = x.astype(cdtype)
    evec_in = eigenvectors.astype(cdtype)
    x_item = cdtype.itemsize
    evec_item = cdtype.itemsize
    out_item = jnp.dtype(out_dtype).itemsize

    # ---- per-generation tiling ---------------------------------------------
    vmem_cap = _vmem_capacity_bytes()
    budget = int(vmem_cap * 0.65)
    single_ok = _single_buffer_supported()
    kp0 = _round_up(max(num_components, 1), _LANE)
    tb, tk, tf, evec_single = _choose_tiles(
        batch, kp0, feat, x_item, evec_item, budget, single_ok,
        block_b, block_k, block_f)

    f_tiled = tf < feat
    fp = _round_up(feat, tf) if f_tiled else feat
    kp = _round_up(kp0, tk)
    b_blocks = pl.cdiv(batch, tb)
    k_blocks = kp // tk
    f_blocks = fp // tf

    # ---- padding (cheap parameter-side pads; x only when F must be tiled) ---
    if (kp, fp) != (num_components, feat):
        evec_in = jnp.pad(evec_in, ((0, kp - num_components), (0, fp - feat)))
    if kp != num_components:
        bias = jnp.pad(bias, (0, kp - num_components))
        scale = jnp.pad(scale, (0, kp - num_components), constant_values=1.0)
    if fp != feat:
        # Zero-padding keeps the partial contraction blocks exact.
        x_in = jnp.pad(x_in, ((0, 0), (0, fp - feat)))
    bias2d = bias.reshape(1, kp)
    scale2d = scale.reshape(1, kp)

    # ---- VMEM accounting / compiler params ----------------------------------
    vmem_need = (
        2 * tb * tf * x_item                              # x double buffer
        + (1 if evec_single else 2) * tk * tf * evec_item  # eigenvector buffer(s)
        + 2 * tb * tk * out_item                           # output double buffer
        + (tb * tk * 4 if f_tiled else 0)                  # f32 accumulator
        + 4 * tk * 4                                       # bias + scale
    )
    headroom = 16 * 1024 * 1024 + (tk * tf * evec_item if evec_single else 0)
    vmem_limit = max(vmem_need + 2 * 1024 * 1024,
                     min(int(vmem_cap * 0.9), vmem_need + headroom))

    cost = pl.CostEstimate(
        flops=2 * batch * fp * kp,
        transcendentals=0,
        bytes_accessed=int(batch * fp * x_item + kp * fp * evec_item
                           + batch * kp * out_item + 2 * kp * 4),
    )

    small_single = single_ok and k_blocks == 1

    if not f_tiled:
        grid = (b_blocks, k_blocks)
        in_specs = [
            pl.BlockSpec((tb, tf), lambda i, j: (i, 0)),
            _spec((tk, tf), lambda i, j: (j, 0), single_buffer=evec_single),
            _spec((1, tk), lambda i, j: (0, j), single_buffer=small_single),
            _spec((1, tk), lambda i, j: (0, j), single_buffer=small_single),
        ]
        out_specs = pl.BlockSpec((tb, tk), lambda i, j: (i, j))
        scratch_shapes = []
        kernel = _pca_kernel
        dims = ("parallel", "parallel")
    else:
        grid = (b_blocks, k_blocks, f_blocks)
        in_specs = [
            pl.BlockSpec((tb, tf), lambda i, j, f: (i, f)),
            pl.BlockSpec((tk, tf), lambda i, j, f: (j, f)),
            _spec((1, tk), lambda i, j, f: (0, j), single_buffer=small_single),
            _spec((1, tk), lambda i, j, f: (0, j), single_buffer=small_single),
        ]
        out_specs = pl.BlockSpec((tb, tk), lambda i, j, f: (i, j))
        scratch_shapes = [pltpu.VMEM((tb, tk), jnp.float32)]
        kernel = _pca_kernel_acc
        dims = ("parallel", "parallel", "arbitrary")

    z = pl.pallas_call(
        kernel,
        out_shape=jax.ShapeDtypeStruct((batch, kp), out_dtype),
        grid_spec=pltpu.PrefetchScalarGridSpec(
            num_scalar_prefetch=0,
            grid=grid,
            in_specs=in_specs,
            out_specs=out_specs,
            scratch_shapes=scratch_shapes,
        ),
        compiler_params=pltpu.CompilerParams(
            dimension_semantics=dims,
            vmem_limit_bytes=int(vmem_limit),
        ),
        cost_estimate=cost,
    )(x_in, evec_in, bias2d, scale2d)

    return z[:, :num_components]


def pca_encoder_ref(x, eigenvectors, eigenvalues, mean=None, *, whiten=False):
    """Pure-JAX reference matching the PyTorch forward."""
    if mean is None:
        mean = jnp.zeros((x.shape[1],), x.dtype)
    z = (x - mean) @ eigenvectors.T
    if whiten:
        z = z / jnp.sqrt(eigenvalues)
    return z


# --------------------------------------------------------------------------- #
# Self-test
# --------------------------------------------------------------------------- #
if __name__ == "__main__":
    keys = jax.random.split(jax.random.PRNGKey(0), 4)

    def make(key, batch, feat, k, zero_mean=False):
        kx, ke, kv, km = jax.random.split(key, 4)
        x = jax.random.normal(kx, (batch, feat), jnp.float32)
        evec = jax.random.uniform(ke, (k, feat), jnp.float32)
        evals = jax.random.uniform(kv, (k,), jnp.float32) + 0.1
        mean = None if zero_mean else 0.1 * jax.random.normal(km, (feat,), jnp.float32)
        return x, evec, evals, mean

    # 1) Module-sized case (PCAEncoder defaults; mean=None -> zeros).
    x, evec, evals, mean = make(keys[0], 8, 32, 8, zero_mean=True)
    for whiten in (False, True):
        z = pca_encoder(x, evec, evals, mean, whiten=whiten)
        jax.block_until_ready(z)
        zr = pca_encoder_ref(x, evec, evals, mean, whiten=whiten)
        assert z.shape == (8, 8)
        assert jnp.allclose(z, zr, atol=1e-5, rtol=1e-5), float(jnp.max(jnp.abs(z - zr)))

    # 2) Non-aligned batch, nonzero mean, auto tiling (masked partial batch block).
    x, evec, evals, mean = make(keys[1], 37, 160, 24)
    z = pca_encoder(x, evec, evals, mean, whiten=True)
    jax.block_until_ready(z)
    zr = pca_encoder_ref(x, evec, evals, mean, whiten=True)
    assert jnp.allclose(z, zr, atol=5e-4, rtol=5e-4), float(jnp.max(jnp.abs(z - zr)))

    # 3) Forced K/F tiling: exercises the accumulator kernel + F zero-padding.
    x, evec, evals, mean = make(keys[2], 64, 320, 256)
    z = pca_encoder(x, evec, evals, mean, whiten=True,
                    block_b=16, block_k=128, block_f=128)
    jax.block_until_ready(z)
    zr = pca_encoder_ref(x, evec, evals, mean, whiten=True)
    assert jnp.allclose(z, zr, atol=5e-4, rtol=5e-4), float(jnp.max(jnp.abs(z - zr)))

    # 4) Optional bf16 compute path (compared against a bf16-quantized reference).
    x, evec, evals, mean = make(keys[3], 16, 256, 64, zero_mean=True)
    z = pca_encoder(x, evec, evals, mean, whiten=False, compute_dtype=jnp.bfloat16)
    jax.block_until_ready(z)
    xq = x.astype(jnp.bfloat16).astype(jnp.float32)
    eq = evec.astype(jnp.bfloat16).astype(jnp.float32)
    zr = pca_encoder_ref(xq, eq, evals, mean, whiten=False)
    assert jnp.allclose(z, zr, atol=5e-2, rtol=5e-2), float(jnp.max(jnp.abs(z - zr)))

    print("KERNEL_OK")
</pallas_src>

<mosaic_0001>
module attributes {stable_mosaic.version = 11 : i64} {
  func.func @_copy(%arg0: i32, %arg1: memref<8x128xf32, #tpu.memory_space<vmem>>, %arg2: memref<8x128xf32, #tpu.memory_space<vmem>>) attributes {dimension_semantics = [#tpu.dimension_semantics<arbitrary>], iteration_bounds = array<i64: 2>, scalar_prefetch = 0 : i64, scratch_operands = 0 : i64, tpu.core_type = #tpu.core_type<tc>, window_params = [{pipeline_mode = #tpu.pipeline_mode<synchronous>, transform_indices = @transform_0, window_bounds = array<i64: 8, 128>}, {pipeline_mode = #tpu.pipeline_mode<synchronous>, transform_indices = @transform_1, window_bounds = array<i64: 8, 128>}]} {
    %c0 = arith.constant 0 : index
    %c0_0 = arith.constant 0 : index
    %0 = vector.load %arg1[%c0, %c0_0] : memref<8x128xf32, #tpu.memory_space<vmem>>, vector<8x128xf32>
    %c0_1 = arith.constant 0 : index
    %c0_2 = arith.constant 0 : index
    %1 = vector.load %arg2[%c0_1, %c0_2] : memref<8x128xf32, #tpu.memory_space<vmem>>, vector<8x128xf32>
    tpu.vector_store %arg2[%c0_1, %c0_2], %0 {strides = array<i32>} : memref<8x128xf32, #tpu.memory_space<vmem>>, vector<8x128xf32>,
    return
  }
  func.func @transform_0(%arg0: i32) -> (i32, i32) {
    %c0_i32 = arith.constant 0 : i32
    %c0_i32_0 = arith.constant 0 : i32
    %c0_i32_1 = arith.constant 0 : i32
    return %c0_i32, %c0_i32_0 : i32, i32
  }
  func.func @transform_1(%arg0: i32) -> (i32, i32) {
    %c0_i32 = arith.constant 0 : i32
    %c0_i32_0 = arith.constant 0 : i32
    %c0_i32_1 = arith.constant 0 : i32
    return %c0_i32, %c0_i32_0 : i32, i32
  }
}

module attributes {stable_mosaic.version = 11 : i64} {
  func.func @_pca_kernel(%arg0: i32, %arg1: i32, %arg2: memref<8x32xf32, #tpu.memory_space<vmem>>, %arg3: memref<128x32xf32, #tpu.memory_space<vmem>>, %arg4: memref<1x128xf32, #tpu.memory_space<vmem>>, %arg5: memref<1x128xf32, #tpu.memory_space<vmem>>, %arg6: memref<8x128xf32, #tpu.memory_space<vmem>>) attributes {dimension_semantics = [#tpu.dimension_semantics<parallel>, #tpu.dimension_semantics<parallel>], iteration_bounds = array<i64: 1, 1>, scalar_prefetch = 0 : i64, scratch_operands = 0 : i64, tpu.core_type = #tpu.core_type<tc>, window_params = [{transform_indices = @transform_0, window_bounds = array<i64: 8, 32>}, {transform_indices = @transform_1, window_bounds = array<i64: 128, 32>}, {transform_indices = @transform_2, window_bounds = array<i64: 1, 128>}, {transform_indices = @transform_3, window_bounds = array<i64: 1, 128>}, {transform_indices = @transform_4, window_bounds = array<i64: 8, 128>}]} {
    %c0 = arith.constant 0 : index
    %c0_0 = arith.constant 0 : index
    %0 = vector.load %arg2[%c0, %c0_0] : memref<8x32xf32, #tpu.memory_space<vmem>>, vector<8x32xf32>
    %c0_1 = arith.constant 0 : index
    %c0_2 = arith.constant 0 : index
    %1 = vector.load %arg3[%c0_1, %c0_2] : memref<128x32xf32, #tpu.memory_space<vmem>>, vector<128x32xf32>
    %cst = arith.constant dense<0.000000e+00> : vector<8x128xf32>
    %2 = tpu.matmul %0, %1, %cst {dimension_numbers = #tpu.dot_dimension_numbers<[1], [1], [0], [0], [0, 0, 1, 0], [], []>} : vector<8x32xf32>, vector<128x32xf32>, vector<8x128xf32> -> vector<8x128xf32>
    %c0_3 = arith.constant 0 : index
    %c0_4 = arith.constant 0 : index
    %3 = vector.load %arg4[%c0_3, %c0_4] : memref<1x128xf32, #tpu.memory_space<vmem>>, vector<1x128xf32>
    %4 = vector.broadcast %3 : vector<1x128xf32> to vector<8x128xf32>
    %5 = arith.subf %2, %4 : vector<8x128xf32>
    %c0_5 = arith.constant 0 : index
    %c0_6 = arith.constant 0 : index
    %6 = vector.load %arg5[%c0_5, %c0_6] : memref<1x128xf32, #tpu.memory_space<vmem>>, vector<1x128xf32>
    %7 = vector.broadcast %6 : vector<1x128xf32> to vector<8x128xf32>
    %8 = arith.mulf %5, %7 : vector<8x128xf32>
    %c0_7 = arith.constant 0 : index
    %c0_8 = arith.constant 0 : index
    %9 = vector.load %arg6[%c0_7, %c0_8] : memref<8x128xf32, #tpu.memory_space<vmem>>, vector<8x128xf32>
    tpu.vector_store %arg6[%c0_7, %c0_8], %8 {strides = array<i32>} : memref<8x128xf32, #tpu.memory_space<vmem>>, vector<8x128xf32>,
    return
  }
  func.func @transform_0(%arg0: i32, %arg1: i32) -> (i32, i32) {
    %c0_i32 = arith.constant 0 : i32
    %c0_i32_0 = arith.constant 0 : i32
    return %arg0, %c0_i32 : i32, i32
  }
  func.func @transform_1(%arg0: i32, %arg1: i32) -> (i32, i32) {
    %c0_i32 = arith.constant 0 : i32
    %c0_i32_0 = arith.constant 0 : i32
    return %arg1, %c0_i32 : i32, i32
  }
  func.func @transform_2(%arg0: i32, %arg1: i32) -> (i32, i32) {
    %c0_i32 = arith.constant 0 : i32
    %c0_i32_0 = arith.constant 0 : i32
    return %c0_i32, %arg1 : i32, i32
  }
  func.func @transform_3(%arg0: i32, %arg1: i32) -> (i32, i32) {
    %c0_i32 = arith.constant 0 : i32
    %c0_i32_0 = arith.constant 0 : i32
    return %c0_i32, %arg1 : i32, i32
  }
  func.func @transform_4(%arg0: i32, %arg1: i32) -> (i32, i32) {
    %c0_i32 = arith.constant 0 : i32
    return %arg0, %arg1 : i32, i32
  }
}

</mosaic_0001>

<bundles_post_ra>
// kernel: tpu_custom_call.1
= control target key start
LH: loop header
LB: loop body
LE: loop exit
PB: predicated region body
PF: predicated region fallthrough
CT: control target
= control target key end

     0   :  { %6 = vsyncpa [#allocation3], 0  ;;  %s304_s0 = inlined_call_operand.hbm [shape: f32[8,128], index: 0, kind: input, shape index: {}]   ;;  %s305_s1 = inlined_call_operand.hbm [shape: f32[8,128], index: 1, kind: output, shape index: {}]  }
   0x1   :  { %7 = vsyncpa [#allocation4], 0  ;;  %s257_s6 = smov 0  }
   0x2 LB: > { %s144_s7 = sadd.s32 4294967295, %s243_s6   ;;  %p145_p0 = scmp.ge.s32.totalorder %s243_s6, 1  ;;  %s243_s6 = sphi %s257_s6, %s13_s6  }
   0x3   : > { %p60_p1 = scmp.lt.s32.totalorder %s243_s6, 3  ;;  %p269_p3 = scmp.eq.s32.totalorder %s144_s7, 0 }
   0x4   : > { %s245_s10 = smov [#allocation2]  }
   0x5   : > { %p265_p2 = pnand %p145_p0, %p60_p1  ;;  %s73_s11 = sshll.u32 %s245_s10, 4  ;;  %s74_s11 = int_to_ptr.vmem [resolvable:$true] %s73_s11 }
   0x6   : > { %s190_s12 = scalar_lea.vmem %s74_s11, 128  ;;  %p198_p10 = scmp.lt.s32.totalorder %s74_s11, %s74_s11 }
   0x7   : > { %p161_p4 = pneg %p265_p2  ;;  %p191_p7 = scmp.ne.s32.totalorder %s74_s11, %s190_s12 }
   0x8   : > { %p199_p11 = scmp.lt.s32.totalorder %s190_s12, %s190_s12 }
   0x9   : > { %p162_p5 = pnand %p269_p3, %p161_p4 }
   0xa   : > { %p200_p12 = por %p199_p11, %p198_p10 }
   0xb   : > { %p181_p6 = pneg %p162_p5 }
   0xd   : > { %p193_p8 = pnand %p191_p7, %p181_p6 }
   0xf   : > { %p194_p9 = pneg %p193_p8 }
  0x11   : > { %p201_p13 = pnand %p200_p12, %p194_p9 }
  0x13   : > { %204 = shalt.err (!%p201_p13)
}
  0x14   : > { %164 = dma.hbm_to_vmem [thread:$0]  (!%p162_p5), %s304_s0, 128, %s74_s11, [#allocation3]  }
  0x15   : > { %86 = sbr.rel (%p265_p2) target bundleno = 42 (0x2a), region = 24 }
  0x1a   : > { %234 = dma.done.wait (%p269_p3), [#allocation3], 128  }
  0x1b   : > { %236 = vsyncadd (%p269_p3), [#allocation3], 4294967168  ;;  %s246_s15 = smov [#allocation5]   ;;  %p286_p0 = scmp.eq.s32.totalorder %s144_s7, 1  ;;  %v96_v0 = vld [vmem:[#allocation2] sm:$0xff] }
  0x1c   : > { %s105_s16 = sshll.u32 %s246_s15, 4  ;;  %97 = vst [vmem:[#allocation5] sm:$0xff] %v96_v0  ;;  %s106_s16 = int_to_ptr.vmem [resolvable:$true] %s105_s16 }
  0x1d   : > { %s205_s18 = scalar_lea.vmem %s106_s16, 128  ;;  %p212_p5 = scmp.lt.s32.totalorder %s106_s16, %s106_s16 }
  0x1e   : > { %p206_p1 = scmp.ne.s32.totalorder %s106_s16, %s205_s18  ;;  %p213_p6 = scmp.lt.s32.totalorder %s205_s18, %s205_s18 }
  0x20   : > { %p207_p2 = pnand %p206_p1, %p286_p0  ;;  %p214_p7 = por %p213_p6, %p212_p5 }
  0x22   : > { %p208_p4 = pneg %p207_p2 }
  0x24   : > { %p215_p8 = pnand %p214_p7, %p208_p4 }
  0x26   : > { %218 = shalt.err (!%p215_p8)
}
  0x27   : > { %158 = dma.vmem_to_hbm [thread:$0]  (%p286_p0), %s106_s16, 128, %s305_s1, [#allocation4]  }
  0x28   : > { %238 = dma.done.wait (%p286_p0), [#allocation4], 128  }
  0x29   : > { %240 = vsyncadd (%p286_p0), [#allocation4], 4294967168 }
  0x2a PF: > { %s13_s6 = sadd.s32 1, %s243_s6  }
  0x2b   : > { %p10_p3 = scmp.ge.s32.totalorder %s13_s6, 4  }
  0x2d   :  { %12 = sbr.rel (!%p10_p3) target bundleno = 2 (0x2), region = 53 }
  0x32   :  { %118 = vsyncpa [#allocation3], 1 }
  0x33   :  { %120 = vsyncpa [#allocation3 + $0x1], 1 }
  0x34   :  { %121 = vsyncpa [#allocation4], 1 }
  0x35   :  { %123 = vsyncpa [#allocation4 + $0x1], 1 }

// kernel: tpu_custom_call.1
= control target key start
LH: loop header
LB: loop body
LE: loop exit
PB: predicated region body
PF: predicated region fallthrough
CT: control target
= control target key end

     0   :  { %vm35_vm0 = vcmask 261120   ;;  %v284_v1 = vmov 0.0   ;;  %vm285_vm1 = vmmov 0   ;;  %s389_s0 = inlined_call_operand.vmem [shape: f32[8,32], index: 0, kind: input, shape index: {}]   ;;  %s390_s1 = inlined_call_operand.vmem [shape: f32[128,32], index: 1, kind: input, shape index: {}]   ;;  %s391_s2 = inlined_call_operand.vmem [shape: f32[1,128], index: 2, kind: input, shape index: {}]   ;;  %s392_s3 = inlined_call_operand.vmem [shape: f32[1,128], index: 3, kind: input, shape index: {}]   ;;  %s393_s4 = inlined_call_operand.hbm [shape: f32[8,128], index: 4, kind: output, shape index: {}]  }
   0x1   :  { %v34_v0 = vld [vmem:[%s390_s1 + $0x78] sm:$0xff]  ;;  %224 = vmatprep.subr.mxu0 %v284_v1  ;;  %256 = vmatprep.mubr.msk.f32.mxu0 %vm285_vm1, %v284_v1  ;;  %v33_v2 = vld [vmem:[%s390_s1 + $0x70] sm:$0xff] }
   0x2   :  { %225 = vmatpush3.xpose.msk.msra.mxu0 %vm35_vm0, %v34_v0 }
   0x3   :  { %226 = vmatprep.subr.mxu0 %v284_v1 }
   0x4   :  { %9 = vsyncpa [#allocation3], 0  ;;  %v32_v3 = vld [vmem:[%s390_s1 + $0x68] sm:$0xff]  ;;  %v31_v4 = vld [vmem:[%s390_s1 + $0x60] sm:$0xff]  ;;  %s286_s27 = smov [#allocation2]  }
   0x5   :  { %v30_v5 = vld [vmem:[%s390_s1 + $0x58] sm:$0xff]  ;;  %v29_v6 = vld [vmem:[%s390_s1 + $0x50] sm:$0xff]  ;;  %v28_v7 = vld [vmem:[%s390_s1 + $0x48] sm:$0xff]  ;;  %s180_s28 = sshll.u32 %s286_s27, 4  ;;  %s181_s28 = int_to_ptr.vmem [resolvable:$true] %s180_s28 }
   0x6   :  { %227 = vmatpush3.xpose.msk.msra.mxu0 %vm35_vm0, %v33_v2  ;;  %v27_v8 = vld [vmem:[%s390_s1 + $0x40] sm:$0xff]  ;;  %v26_v9 = vld [vmem:[%s390_s1 + $0x38] sm:$0xff]  ;;  %v25_v10 = vld [vmem:[%s390_s1 + $0x30] sm:$0xff]  ;;  %p267_p1 = scmp.lt.s32.totalorder %s181_s28, %s181_s28 }
   0x7   :  { %228 = vmatprep.subr.mxu0 %v284_v1  ;;  %v24_v11 = vld [vmem:[%s390_s1 + $0x28] sm:$0xff]  ;;  %v23_v12 = vld [vmem:[%s390_s1 + $0x20] sm:$0xff]  ;;  %v22_v13 = vld [vmem:[%s390_s1 + $0x18] sm:$0xff] }
   0x8   :  { %v21_v14 = vld [vmem:[%s390_s1 + $0x10] sm:$0xff]  ;;  %v20_v15 = vld [vmem:[%s390_s1 + $0x8] sm:$0xff]  ;;  %v19_v16 = vld [vmem:[%s390_s1] sm:$0xff]  ;;  %s262_s1 = scalar_lea.vmem %s181_s28, 128 }
   0x9   :  { %v18_v17 = vld [vmem:[%s389_s0] sm:$0xff]  ;;  %p263_p0 = scmp.ne.s32.totalorder %s181_s28, %s262_s1  ;;  %p268_p2 = scmp.lt.s32.totalorder %s262_s1, %s262_s1 }
   0xa   :  { %229 = vmatpush3.xpose.msk.msra.mxu0 %vm35_vm0, %v32_v3  ;;  %v205_v18 = vld [vmem:[%s391_s2] ss:$0 sm:$0xff] }
   0xb   :  { %230 = vmatprep.subr.mxu0 %v284_v1  ;;  %v206_v20 = vld [vmem:[%s392_s3] ss:$0 sm:$0xff]  ;;  %p269_p3 = por %p268_p2, %p267_p1 }
   0xd   :  { %p270_p4 = pnand %p269_p3, %p263_p0 }
   0xe   :  { %231 = vmatpush3.xpose.msk.msra.mxu0 %vm35_vm0, %v31_v4 }
   0xf   :  { %232 = vmatprep.subr.mxu0 %v284_v1 }
  0x12   :  { %233 = vmatpush3.xpose.msk.msra.mxu0 %vm35_vm0, %v30_v5 }
  0x13   :  { %234 = vmatprep.subr.mxu0 %v284_v1 }
  0x16   :  { %235 = vmatpush3.xpose.msk.msra.mxu0 %vm35_vm0, %v29_v6 }
  0x17   :  { %236 = vmatprep.subr.mxu0 %v284_v1 }
  0x1a   :  { %237 = vmatpush3.xpose.msk.msra.mxu0 %vm35_vm0, %v28_v7 }
  0x1b   :  { %238 = vmatprep.subr.mxu0 %v284_v1 }
  0x1e   :  { %239 = vmatpush3.xpose.msk.msra.mxu0 %vm35_vm0, %v27_v8 }
  0x1f   :  { %240 = vmatprep.subr.mxu0 %v284_v1 }
  0x22   :  { %241 = vmatpush3.xpose.msk.msra.mxu0 %vm35_vm0, %v26_v9 }
  0x23   :  { %242 = vmatprep.subr.mxu0 %v284_v1 }
  0x26   :  { %243 = vmatpush3.xpose.msk.msra.mxu0 %vm35_vm0, %v25_v10 }
  0x27   :  { %244 = vmatprep.subr.mxu0 %v284_v1 }
  0x2a   :  { %245 = vmatpush3.xpose.msk.msra.mxu0 %vm35_vm0, %v24_v11 }
  0x2b   :  { %246 = vmatprep.subr.mxu0 %v284_v1 }
  0x2e   :  { %247 = vmatpush3.xpose.msk.msra.mxu0 %vm35_vm0, %v23_v12 }
  0x2f   :  { %248 = vmatprep.subr.mxu0 %v284_v1 }
  0x32   :  { %249 = vmatpush3.xpose.msk.msra.mxu0 %vm35_vm0, %v22_v13 }
  0x33   :  { %250 = vmatprep.subr.mxu0 %v284_v1 }
  0x36   :  { %251 = vmatpush3.xpose.msk.msra.mxu0 %vm35_vm0, %v21_v14 }
  0x37   :  { %252 = vmatprep.subr.mxu0 %v284_v1 }
  0x3a   :  { %253 = vmatpush3.xpose.msk.msra.mxu0 %vm35_vm0, %v20_v15 }
  0x3b   :  { %254 = vmatprep.subr.mxu0 %v284_v1 }
  0x3e   :  { %255 = vmatpush3.xpose.msk.msra.mxu0 %vm35_vm0, %v19_v16 }
  0x41   :  { %257 = vmatmul.mubr.msk.f32.vlgmr.msra.gmra.mxu0 %vm35_vm0, %v18_v17 }
 0x101   :  { %v153_v19 = vpop.f32.mrf.mxu0 }
 0x102   :  { %v164_v21 = vsub.f32 %v153_v19, %v205_v18 }
 0x103   :  { %v258_v22 = vpop.f32.mrf.mxu0 }
 0x104   :  { %v172_v23 = vmul.f32 %v206_v20, %v164_v21 }
 0x106   :  { %173 = vst [vmem:[#allocation2] sm:$0xff] %v172_v23 }
 0x107   :  { %273 = shalt.err (!%p270_p4)
}
 0x108   :  { %183 = dma.vmem_to_hbm [thread:$0]  %s181_s28, 128, %s393_s4, [#allocation3]  }
 0x109   :  { %282 = dma.done.wait [#allocation3], 128  }
 0x10a   :  { %283 = vsyncadd [#allocation3], 4294967168 }
 0x10b   :  { %187 = vsyncpa [#allocation3], 1 }

</bundles_post_ra>
